<compile_context>
chip_gen: v7x
topology: tpu7x:2x2x1
jax: 0.10.0
libtpu: 0.0.40
codegen_flags: <defaults>
</compile_context>

<pallas_src>
import numpy as np
import jax
import jax.numpy as jnp
from jax import lax
from jax.experimental import pallas as pl
from jax.experimental.pallas import tpu as pltpu

# ----------------------------- static sizes -----------------------------
B = 2
IMG_HW = 7
C_IN = 3
C_OUT = 4
K = 2
CONV_HW = IMG_HW - K + 1              # 6
POOL_HW = CONV_HW // 2                # 3
N_POOL = POOL_HW * POOL_HW            # 9
FLAT_CNN = C_OUT * N_POOL             # 36
IMG_FLAT = IMG_HW * IMG_HW * C_IN     # 147
CONV_COLS = K * K * FLAT_CNN          # 144  (4 pool-window offsets x 36)
VOCAB = 16
EMB = 24
HID = 12
GATES = 4 * HID                       # 48, packed gate order (i, f, o, g)
MAX_LEN = 8
L1_IN = FLAT_CNN + MAX_LEN * HID      # 132
L1_OUT = 24
L2_OUT = 30

# row offsets inside the packed bf16 weight slab (16-aligned for bf16 tiling)
R_CONV = 0                            # (147, 144)
R_PROJ = 160                          # (16, 48)   emb_table @ W_ih packed
R_WHH = 176                           # (12, 48)
R_W1C = 192                           # (36, 24)
R_W1L = 240                           # (96, 24)
R_W2 = 336                            # (24, 30)
R_W3 = 368                            # (30, 1)
W_SLAB_ROWS = 400
W_SLAB_LANES = CONV_COLS              # 144


def _vmem():
    return pl.BlockSpec(memory_space=pltpu.MemorySpace.VMEM)


# ----------------------------- fused kernel -----------------------------

def critic_fused_kernel(vis_ref, txt_ref, w_ref, b_ref, out_ref):
    """Conv+pool+embed+LSTM+MLP fused.

    vis_ref: (B, 147)  f32   flattened NHWC image
    txt_ref: (T*B, 1)  int32 time-major mission token ids
    w_ref:   (400,144) bf16  packed weight slab (static row sub-views)
    b_ref:   (8, 48)   f32   packed bias slab
    out_ref: (B, 1)    f32
    """
    f32, bf16 = jnp.float32, jnp.bfloat16
    Bk = vis_ref.shape[0]

    # ---- CNN: conv(2x2) at all 4 pool-window offsets in ONE matmul ----
    vis = vis_ref[...].astype(bf16)                                    # (B,147)
    conv_all = jnp.dot(vis, w_ref[R_CONV:R_CONV + IMG_FLAT, :],
                       preferred_element_type=f32)                     # (B,144)
    conv_max = jnp.maximum(
        jnp.maximum(conv_all[:, 0:FLAT_CNN],
                    conv_all[:, FLAT_CNN:2 * FLAT_CNN]),
        jnp.maximum(conv_all[:, 2 * FLAT_CNN:3 * FLAT_CNN],
                    conv_all[:, 3 * FLAT_CNN:4 * FLAT_CNN]))
    pooled = jnp.maximum(conv_max + b_ref[0:1, :FLAT_CNN], 0.0)        # (B,36)

    # ---- embedding gather + LSTM input projection fused: onehot @ table ----
    ids = txt_ref[...]                                                 # (T*B,1)
    onehot = jnp.where(
        ids == lax.broadcasted_iota(jnp.int32, (MAX_LEN * Bk, VOCAB), 1),
        1.0, 0.0).astype(bf16)                                         # (T*B,16)
    xproj = (jnp.dot(onehot, w_ref[R_PROJ:R_PROJ + VOCAB, :GATES],
                     preferred_element_type=f32)
             + b_ref[1:2, :GATES])                                     # (T*B,48)

    # ---- LSTM recurrence; whh loaded once, hidden states kept in registers ----
    # TODO(synk): pltpu.matmul_push_rhs/acc_lhs could pin whh in the MXU across
    # the 8 serial steps; kept as jnp.dot for portability/robustness.
    whh = w_ref[R_WHH:R_WHH + HID, :GATES]                             # (12,48)
    h = jnp.zeros((Bk, HID), f32)
    c = jnp.zeros((Bk, HID), f32)
    hs = []
    for t in range(MAX_LEN):                                           # static unroll
        pre = xproj[t * Bk:(t + 1) * Bk, :] + jnp.dot(
            h.astype(bf16), whh, preferred_element_type=f32)           # (B,48)
        sig = jax.nn.sigmoid(pre[:, :3 * HID])                         # one EUP pass (i,f,o)
        i_g = sig[:, :HID]
        f_g = sig[:, HID:2 * HID]
        o_g = sig[:, 2 * HID:3 * HID]
        g_g = jnp.tanh(pre[:, 3 * HID:])
        c = f_g * c + i_g * g_g
        h = o_g * jnp.tanh(c)
        hs.append(h)
    lstm_flat = jnp.concatenate(hs, axis=1).astype(bf16)               # (B, 96)

    # ---- MLP head: 132-wide contraction split into 36 + 96 ----
    h1 = jnp.maximum(
        jnp.dot(pooled.astype(bf16), w_ref[R_W1C:R_W1C + FLAT_CNN, :L1_OUT],
                preferred_element_type=f32)
        + jnp.dot(lstm_flat, w_ref[R_W1L:R_W1L + MAX_LEN * HID, :L1_OUT],
                  preferred_element_type=f32)
        + b_ref[2:3, :L1_OUT], 0.0)
    h2 = jnp.maximum(
        jnp.dot(h1.astype(bf16), w_ref[R_W2:R_W2 + L1_OUT, :L2_OUT],
                preferred_element_type=f32)
        + b_ref[3:4, :L2_OUT], 0.0)
    out_ref[...] = (jnp.dot(h2.astype(bf16), w_ref[R_W3:R_W3 + L2_OUT, :1],
                            preferred_element_type=f32)
                    + b_ref[4:5, :1])


def critic_pallas(vis_flat, txt_tm, prep, batch):
    return pl.pallas_call(
        critic_fused_kernel,
        out_shape=jax.ShapeDtypeStruct((batch, 1), jnp.float32),
        in_specs=[_vmem()] * 4,
        out_specs=_vmem(),
    )(vis_flat, txt_tm, prep["wslab"], prep["bslab"])


# ------------------- one-time parameter re-packing (init) -------------------

def prepare_params(params):
    conv_w = np.asarray(params["conv_w"], np.float32)    # (oc, ci, kh, kw)
    conv_b = np.asarray(params["conv_b"], np.float32)

    # Conv2d + im2col + the 4 pool-window offsets folded into ONE (147,144)
    # matrix.  Column block p holds the conv output at pool-window offset p for
    # all 9 pool cells x 4 channels (NHWC flatten order); lane-max over p == pool.
    w_all = np.zeros((IMG_FLAT, CONV_COLS), np.float32)
    for p_idx, (di, dj) in enumerate([(d // K, d % K) for d in range(K * K)]):
        for pr in range(POOL_HW):
            for pc in range(POOL_HW):
                for oc in range(C_OUT):
                    col = p_idx * FLAT_CNN + (pr * POOL_HW + pc) * C_OUT + oc
                    for kh in range(K):
                        for kw in range(K):
                            for ci in range(C_IN):
                                row = ((2 * pr + di + kh) * IMG_HW
                                       + (2 * pc + dj + kw)) * C_IN + ci
                                w_all[row, col] = conv_w[oc, ci, kh, kw]

    # LSTM gates packed (i, f, o, g) so one sigmoid covers i/f/o; embedding
    # gather + input projection folded into a single (VOCAB, 48) table.
    go = (0, 1, 3, 2)
    wih_p = np.concatenate([np.asarray(params["wih_g"][g], np.float32) for g in go], axis=1)
    whh_p = np.concatenate([np.asarray(params["whh_g"][g], np.float32) for g in go], axis=1)
    bg_p = np.concatenate([np.asarray(params["b_g"][g], np.float32) for g in go], axis=1)
    proj = np.asarray(params["emb_table"], np.float32) @ wih_p          # (16, 48)

    # Fold PyTorch's NCHW flatten order (ch, r, c) into w1's rows: the kernel
    # produces CNN features in NHWC flatten order (r, c, ch).
    cnn_perm = np.array([ch * N_POOL + r * POOL_HW + c
                         for r in range(POOL_HW)
                         for c in range(POOL_HW)
                         for ch in range(C_OUT)], dtype=np.int64)
    w1 = np.asarray(params["w1"], np.float32)
    w1_cnn, w1_lstm = w1[:FLAT_CNN][cnn_perm], w1[FLAT_CNN:]

    # ---- one bf16 weight slab (single DMA) + one small f32 bias slab ----
    wslab = np.zeros((W_SLAB_ROWS, W_SLAB_LANES), np.float32)
    wslab[R_CONV:R_CONV + IMG_FLAT, :CONV_COLS] = w_all
    wslab[R_PROJ:R_PROJ + VOCAB, :GATES] = proj
    wslab[R_WHH:R_WHH + HID, :GATES] = whh_p
    wslab[R_W1C:R_W1C + FLAT_CNN, :L1_OUT] = w1_cnn
    wslab[R_W1L:R_W1L + MAX_LEN * HID, :L1_OUT] = w1_lstm
    wslab[R_W2:R_W2 + L1_OUT, :L2_OUT] = np.asarray(params["w2"], np.float32)
    wslab[R_W3:R_W3 + L2_OUT, :1] = np.asarray(params["w3"], np.float32)

    bslab = np.zeros((8, GATES), np.float32)
    bslab[0, :FLAT_CNN] = np.tile(conv_b, N_POOL)
    bslab[1, :GATES] = bg_p[0]
    bslab[2, :L1_OUT] = np.asarray(params["b1"], np.float32)[0]
    bslab[3, :L2_OUT] = np.asarray(params["b2"], np.float32)[0]
    bslab[4, :1] = np.asarray(params["b3"], np.float32)[0]

    return {"wslab": jnp.asarray(wslab, jnp.bfloat16),
            "bslab": jnp.asarray(bslab, jnp.float32)}


# ------------------------------- forward --------------------------------

def critic_forward(prep, vis, txt):
    """prep = prepare_params(params); vis: (B,7,7,3) NHWC; txt: (B, max_len) ids."""
    Bk = vis.shape[0]
    vis_flat = vis.reshape(Bk, IMG_FLAT)                       # contiguous, free
    txt_tm = jnp.transpose(txt).reshape(MAX_LEN * Bk, 1)       # time-major ids
    return critic_pallas(vis_flat, txt_tm, prep, Bk)           # (B, 1)


# ----------------------- deterministic parameters ------------------------

def init_params(key):
    ks = jax.random.split(key, 12)
    s = 0.1
    return {
        "conv_w": s * jax.random.normal(ks[0], (C_OUT, C_IN, K, K), jnp.float32),
        "conv_b": s * jax.random.normal(ks[1], (C_OUT,), jnp.float32),
        "emb_table": s * jax.random.normal(ks[2], (VOCAB, EMB), jnp.float32),
        "wih_g": s * jax.random.normal(ks[3], (4, EMB, HID), jnp.float32),
        "whh_g": s * jax.random.normal(ks[4], (4, HID, HID), jnp.float32),
        "b_g": s * jax.random.normal(ks[5], (4, 1, HID), jnp.float32),
        "w1": s * jax.random.normal(ks[6], (L1_IN, L1_OUT), jnp.float32),
        "b1": s * jax.random.normal(ks[7], (1, L1_OUT), jnp.float32),
        "w2": s * jax.random.normal(ks[8], (L1_OUT, L2_OUT), jnp.float32),
        "b2": s * jax.random.normal(ks[9], (1, L2_OUT), jnp.float32),
        "w3": s * jax.random.normal(ks[10], (L2_OUT, 1), jnp.float32),
        "b3": s * jax.random.normal(ks[11], (1, 1), jnp.float32),
    }


# --------------------------- pure-JAX reference ---------------------------

def reference_forward(params, vis, txt):
    with jax.default_matmul_precision("float32"):
        Bk = vis.shape[0]
        wc, bc = params["conv_w"], params["conv_b"]
        conv = jnp.zeros((Bk, CONV_HW, CONV_HW, C_OUT), jnp.float32)
        for di in range(K):
            for dj in range(K):
                conv = conv + jnp.einsum(
                    "bijc,oc->bijo",
                    vis[:, di:di + CONV_HW, dj:dj + CONV_HW, :], wc[:, :, di, dj])
        conv = jnp.maximum(conv + bc, 0.0)
        pooled = jnp.max(conv.reshape(Bk, POOL_HW, 2, POOL_HW, 2, C_OUT), axis=(2, 4))
        flat_cnn = jnp.transpose(pooled, (0, 3, 1, 2)).reshape(Bk, FLAT_CNN)

        emb = params["emb_table"][txt]                              # (B, T, EMB)
        h = jnp.zeros((Bk, HID), jnp.float32)
        c = jnp.zeros((Bk, HID), jnp.float32)
        outs = []
        for t in range(MAX_LEN):
            x = emb[:, t, :]
            gates = [x @ params["wih_g"][g] + h @ params["whh_g"][g] + params["b_g"][g]
                     for g in range(4)]
            i_g = jax.nn.sigmoid(gates[0])
            f_g = jax.nn.sigmoid(gates[1])
            g_g = jnp.tanh(gates[2])
            o_g = jax.nn.sigmoid(gates[3])
            c = f_g * c + i_g * g_g
            h = o_g * jnp.tanh(c)
            outs.append(h)
        lstm_flat = jnp.stack(outs, axis=1).reshape(Bk, MAX_LEN * HID)

        lin_in = jnp.concatenate([flat_cnn, lstm_flat], axis=1)
        h1 = jnp.maximum(lin_in @ params["w1"] + params["b1"], 0.0)
        h2 = jnp.maximum(h1 @ params["w2"] + params["b2"], 0.0)
        return h2 @ params["w3"] + params["b3"]


# --------------------------------- main -----------------------------------

if __name__ == "__main__":
    key = jax.random.PRNGKey(0)
    kp, kv, kt = jax.random.split(key, 3)
    params = init_params(kp)

    # inputs[0]: NHWC image batch; inputs[1]: mission token ids (B, max_len)
    vis = jax.random.uniform(kv, (B, IMG_HW, IMG_HW, C_IN), jnp.float32)
    txt = jax.random.randint(kt, (B, MAX_LEN), 0, VOCAB, dtype=jnp.int32)

    prep = prepare_params(params)            # one-time weight re-packing
    out = jax.jit(critic_forward)(prep, vis, txt)
    out = jax.block_until_ready(out)

    ref = reference_forward(params, vis, txt)
    assert out.shape == (B, 1), out.shape
    # bf16 MXU operands (f32 accumulation) vs. f32 reference -> loosen atol.
    assert jnp.allclose(out, ref, atol=1e-2, rtol=2e-2), (out, ref)
    print("KERNEL_OK")
</pallas_src>

<mosaic_0001>
module attributes {stable_mosaic.version = 11 : i64} {
  func.func @critic_fused_kernel(%arg0: memref<2x147xf32, #tpu.memory_space<vmem>>, %arg1: memref<16x1xi32, #tpu.memory_space<vmem>>, %arg2: memref<400x144xbf16, #tpu.memory_space<vmem>>, %arg3: memref<8x48xf32, #tpu.memory_space<vmem>>, %arg4: memref<2x1xf32, #tpu.memory_space<vmem>>) attributes {dimension_semantics = [], scalar_prefetch = 0 : i64, scratch_operands = 0 : i64, tpu.core_type = #tpu.core_type<tc>} {
    %c0 = arith.constant 0 : index
    %c0_0 = arith.constant 0 : index
    %0 = vector.load %arg0[%c0, %c0_0] : memref<2x147xf32, #tpu.memory_space<vmem>>, vector<2x147xf32>
    %1 = arith.truncf %0 : vector<2x147xf32> to vector<2x147xbf16>
    %c0_1 = arith.constant 0 : index
    %c0_2 = arith.constant 0 : index
    %2 = vector.load %arg2[%c0_1, %c0_2] : memref<400x144xbf16, #tpu.memory_space<vmem>>, vector<147x144xbf16>
    %cst = arith.constant dense<0.000000e+00> : vector<2x144xf32>
    %3 = tpu.matmul %1, %2, %cst {dimension_numbers = #tpu.dot_dimension_numbers<[1], [0], [0], [1], [0, 0, 1, 1], [], []>} : vector<2x147xbf16>, vector<147x144xbf16>, vector<2x144xf32> -> vector<2x144xf32>
    %4 = vector.extract_strided_slice %3 {offsets = [0, 0], sizes = [2, 36], strides = [1, 1]} : vector<2x144xf32> to vector<2x36xf32>
    %5 = vector.extract_strided_slice %3 {offsets = [0, 36], sizes = [2, 36], strides = [1, 1]} : vector<2x144xf32> to vector<2x36xf32>
    %6 = arith.maximumf %4, %5 : vector<2x36xf32>
    %7 = vector.extract_strided_slice %3 {offsets = [0, 72], sizes = [2, 36], strides = [1, 1]} : vector<2x144xf32> to vector<2x36xf32>
    %8 = vector.extract_strided_slice %3 {offsets = [0, 108], sizes = [2, 36], strides = [1, 1]} : vector<2x144xf32> to vector<2x36xf32>
    %9 = arith.maximumf %7, %8 : vector<2x36xf32>
    %10 = arith.maximumf %6, %9 : vector<2x36xf32>
    %c0_3 = arith.constant 0 : index
    %c0_4 = arith.constant 0 : index
    %11 = vector.load %arg3[%c0_3, %c0_4] : memref<8x48xf32, #tpu.memory_space<vmem>>, vector<1x36xf32>
    %12 = vector.broadcast %11 : vector<1x36xf32> to vector<2x36xf32>
    %13 = arith.addf %10, %12 : vector<2x36xf32>
    %cst_5 = arith.constant 0.000000e+00 : f32
    %14 = vector.broadcast %cst_5 : f32 to vector<2x36xf32>
    %15 = arith.maximumf %13, %14 : vector<2x36xf32>
    %c0_6 = arith.constant 0 : index
    %c0_7 = arith.constant 0 : index
    %16 = vector.load %arg1[%c0_6, %c0_7] : memref<16x1xi32, #tpu.memory_space<vmem>>, vector<16x1xi32>
    %17 = tpu.iota {dimensions = array<i32: 1>} : vector<16x16xi32>
    %18 = vector.broadcast %16 : vector<16x1xi32> to vector<16x16xi32>
    %19 = arith.cmpi eq, %18, %17 : vector<16x16xi32>
    %cst_8 = arith.constant 1.000000e+00 : f32
    %cst_9 = arith.constant 0.000000e+00 : f32
    %20 = vector.broadcast %cst_8 : f32 to vector<16x16xf32>
    %21 = vector.broadcast %cst_9 : f32 to vector<16x16xf32>
    %22 = arith.select %19, %20, %21 : vector<16x16xi1>, vector<16x16xf32>
    %23 = arith.truncf %22 : vector<16x16xf32> to vector<16x16xbf16>
    %c160 = arith.constant 160 : index
    %c0_10 = arith.constant 0 : index
    %24 = vector.load %arg2[%c160, %c0_10] : memref<400x144xbf16, #tpu.memory_space<vmem>>, vector<16x48xbf16>
    %cst_11 = arith.constant dense<0.000000e+00> : vector<16x48xf32>
    %25 = tpu.matmul %23, %24, %cst_11 {dimension_numbers = #tpu.dot_dimension_numbers<[1], [0], [0], [1], [0, 0, 1, 1], [], []>} : vector<16x16xbf16>, vector<16x48xbf16>, vector<16x48xf32> -> vector<16x48xf32>
    %c1 = arith.constant 1 : index
    %c0_12 = arith.constant 0 : index
    %26 = vector.load %arg3[%c1, %c0_12] : memref<8x48xf32, #tpu.memory_space<vmem>>, vector<1x48xf32>
    %27 = vector.broadcast %26 : vector<1x48xf32> to vector<16x48xf32>
    %28 = arith.addf %25, %27 : vector<16x48xf32>
    %c176 = arith.constant 176 : index
    %c0_13 = arith.constant 0 : index
    %29 = vector.load %arg2[%c176, %c0_13] : memref<400x144xbf16, #tpu.memory_space<vmem>>, vector<12x48xbf16>
    %cst_14 = arith.constant 0.000000e+00 : f32
    %30 = vector.broadcast %cst_14 : f32 to vector<2x12xf32>
    %cst_15 = arith.constant 0.000000e+00 : f32
    %31 = vector.broadcast %cst_15 : f32 to vector<2x12xf32>
    %32 = vector.extract_strided_slice %28 {offsets = [0, 0], sizes = [2, 48], strides = [1, 1]} : vector<16x48xf32> to vector<2x48xf32>
    %33 = arith.truncf %30 : vector<2x12xf32> to vector<2x12xbf16>
    %cst_16 = arith.constant dense<0.000000e+00> : vector<2x48xf32>
    %34 = tpu.matmul %33, %29, %cst_16 {dimension_numbers = #tpu.dot_dimension_numbers<[1], [0], [0], [1], [0, 0, 1, 1], [], []>} : vector<2x12xbf16>, vector<12x48xbf16>, vector<2x48xf32> -> vector<2x48xf32>
    %35 = arith.addf %32, %34 : vector<2x48xf32>
    %36 = vector.extract_strided_slice %35 {offsets = [0, 0], sizes = [2, 36], strides = [1, 1]} : vector<2x48xf32> to vector<2x36xf32>
    %37 = arith.negf %36 : vector<2x36xf32>
    %38 = math.exp %37 : vector<2x36xf32>
    %cst_17 = arith.constant 1.000000e+00 : f32
    %39 = vector.broadcast %cst_17 : f32 to vector<2x36xf32>
    %40 = arith.addf %39, %38 : vector<2x36xf32>
    %41 = arith.divf %39, %40 : vector<2x36xf32>
    %42 = vector.extract_strided_slice %41 {offsets = [0, 0], sizes = [2, 12], strides = [1, 1]} : vector<2x36xf32> to vector<2x12xf32>
    %43 = vector.extract_strided_slice %41 {offsets = [0, 12], sizes = [2, 12], strides = [1, 1]} : vector<2x36xf32> to vector<2x12xf32>
    %44 = vector.extract_strided_slice %41 {offsets = [0, 24], sizes = [2, 12], strides = [1, 1]} : vector<2x36xf32> to vector<2x12xf32>
    %45 = vector.extract_strided_slice %35 {offsets = [0, 36], sizes = [2, 12], strides = [1, 1]} : vector<2x48xf32> to vector<2x12xf32>
    %46 = math.tanh %45 : vector<2x12xf32>
    %47 = arith.mulf %43, %31 : vector<2x12xf32>
    %48 = arith.mulf %42, %46 : vector<2x12xf32>
    %49 = arith.addf %47, %48 : vector<2x12xf32>
    %50 = math.tanh %49 : vector<2x12xf32>
    %51 = arith.mulf %44, %50 : vector<2x12xf32>
    %52 = vector.extract_strided_slice %28 {offsets = [2, 0], sizes = [2, 48], strides = [1, 1]} : vector<16x48xf32> to vector<2x48xf32>
    %53 = arith.truncf %51 : vector<2x12xf32> to vector<2x12xbf16>
    %cst_18 = arith.constant dense<0.000000e+00> : vector<2x48xf32>
    %54 = tpu.matmul %53, %29, %cst_18 {dimension_numbers = #tpu.dot_dimension_numbers<[1], [0], [0], [1], [0, 0, 1, 1], [], []>} : vector<2x12xbf16>, vector<12x48xbf16>, vector<2x48xf32> -> vector<2x48xf32>
    %55 = arith.addf %52, %54 : vector<2x48xf32>
    %56 = vector.extract_strided_slice %55 {offsets = [0, 0], sizes = [2, 36], strides = [1, 1]} : vector<2x48xf32> to vector<2x36xf32>
    %57 = arith.negf %56 : vector<2x36xf32>
    %58 = math.exp %57 : vector<2x36xf32>
    %cst_19 = arith.constant 1.000000e+00 : f32
    %59 = vector.broadcast %cst_19 : f32 to vector<2x36xf32>
    %60 = arith.addf %59, %58 : vector<2x36xf32>
    %61 = arith.divf %59, %60 : vector<2x36xf32>
    %62 = vector.extract_strided_slice %61 {offsets = [0, 0], sizes = [2, 12], strides = [1, 1]} : vector<2x36xf32> to vector<2x12xf32>
    %63 = vector.extract_strided_slice %61 {offsets = [0, 12], sizes = [2, 12], strides = [1, 1]} : vector<2x36xf32> to vector<2x12xf32>
    %64 = vector.extract_strided_slice %61 {offsets = [0, 24], sizes = [2, 12], strides = [1, 1]} : vector<2x36xf32> to vector<2x12xf32>
    %65 = vector.extract_strided_slice %55 {offsets = [0, 36], sizes = [2, 12], strides = [1, 1]} : vector<2x48xf32> to vector<2x12xf32>
    %66 = math.tanh %65 : vector<2x12xf32>
    %67 = arith.mulf %63, %49 : vector<2x12xf32>
    %68 = arith.mulf %62, %66 : vector<2x12xf32>
    %69 = arith.addf %67, %68 : vector<2x12xf32>
    %70 = math.tanh %69 : vector<2x12xf32>
    %71 = arith.mulf %64, %70 : vector<2x12xf32>
    %72 = vector.extract_strided_slice %28 {offsets = [4, 0], sizes = [2, 48], strides = [1, 1]} : vector<16x48xf32> to vector<2x48xf32>
    %73 = arith.truncf %71 : vector<2x12xf32> to vector<2x12xbf16>
    %cst_20 = arith.constant dense<0.000000e+00> : vector<2x48xf32>
    %74 = tpu.matmul %73, %29, %cst_20 {dimension_numbers = #tpu.dot_dimension_numbers<[1], [0], [0], [1], [0, 0, 1, 1], [], []>} : vector<2x12xbf16>, vector<12x48xbf16>, vector<2x48xf32> -> vector<2x48xf32>
    %75 = arith.addf %72, %74 : vector<2x48xf32>
    %76 = vector.extract_strided_slice %75 {offsets = [0, 0], sizes = [2, 36], strides = [1, 1]} : vector<2x48xf32> to vector<2x36xf32>
    %77 = arith.negf %76 : vector<2x36xf32>
    %78 = math.exp %77 : vector<2x36xf32>
    %cst_21 = arith.constant 1.000000e+00 : f32
    %79 = vector.broadcast %cst_21 : f32 to vector<2x36xf32>
    %80 = arith.addf %79, %78 : vector<2x36xf32>
    %81 = arith.divf %79, %80 : vector<2x36xf32>
    %82 = vector.extract_strided_slice %81 {offsets = [0, 0], sizes = [2, 12], strides = [1, 1]} : vector<2x36xf32> to vector<2x12xf32>
    %83 = vector.extract_strided_slice %81 {offsets = [0, 12], sizes = [2, 12], strides = [1, 1]} : vector<2x36xf32> to vector<2x12xf32>
    %84 = vector.extract_strided_slice %81 {offsets = [0, 24], sizes = [2, 12], strides = [1, 1]} : vector<2x36xf32> to vector<2x12xf32>
    %85 = vector.extract_strided_slice %75 {offsets = [0, 36], sizes = [2, 12], strides = [1, 1]} : vector<2x48xf32> to vector<2x12xf32>
    %86 = math.tanh %85 : vector<2x12xf32>
    %87 = arith.mulf %83, %69 : vector<2x12xf32>
    %88 = arith.mulf %82, %86 : vector<2x12xf32>
    %89 = arith.addf %87, %88 : vector<2x12xf32>
    %90 = math.tanh %89 : vector<2x12xf32>
    %91 = arith.mulf %84, %90 : vector<2x12xf32>
    %92 = vector.extract_strided_slice %28 {offsets = [6, 0], sizes = [2, 48], strides = [1, 1]} : vector<16x48xf32> to vector<2x48xf32>
    %93 = arith.truncf %91 : vector<2x12xf32> to vector<2x12xbf16>
    %cst_22 = arith.constant dense<0.000000e+00> : vector<2x48xf32>
    %94 = tpu.matmul %93, %29, %cst_22 {dimension_numbers = #tpu.dot_dimension_numbers<[1], [0], [0], [1], [0, 0, 1, 1], [], []>} : vector<2x12xbf16>, vector<12x48xbf16>, vector<2x48xf32> -> vector<2x48xf32>
    %95 = arith.addf %92, %94 : vector<2x48xf32>
    %96 = vector.extract_strided_slice %95 {offsets = [0, 0], sizes = [2, 36], strides = [1, 1]} : vector<2x48xf32> to vector<2x36xf32>
    %97 = arith.negf %96 : vector<2x36xf32>
    %98 = math.exp %97 : vector<2x36xf32>
    %cst_23 = arith.constant 1.000000e+00 : f32
    %99 = vector.broadcast %cst_23 : f32 to vector<2x36xf32>
    %100 = arith.addf %99, %98 : vector<2x36xf32>
    %101 = arith.divf %99, %100 : vector<2x36xf32>
    %102 = vector.extract_strided_slice %101 {offsets = [0, 0], sizes = [2, 12], strides = [1, 1]} : vector<2x36xf32> to vector<2x12xf32>
    %103 = vector.extract_strided_slice %101 {offsets = [0, 12], sizes = [2, 12], strides = [1, 1]} : vector<2x36xf32> to vector<2x12xf32>
    %104 = vector.extract_strided_slice %101 {offsets = [0, 24], sizes = [2, 12], strides = [1, 1]} : vector<2x36xf32> to vector<2x12xf32>
    %105 = vector.extract_strided_slice %95 {offsets = [0, 36], sizes = [2, 12], strides = [1, 1]} : vector<2x48xf32> to vector<2x12xf32>
    %106 = math.tanh %105 : vector<2x12xf32>
    %107 = arith.mulf %103, %89 : vector<2x12xf32>
    %108 = arith.mulf %102, %106 : vector<2x12xf32>
    %109 = arith.addf %107, %108 : vector<2x12xf32>
    %110 = math.tanh %109 : vector<2x12xf32>
    %111 = arith.mulf %104, %110 : vector<2x12xf32>
    %112 = vector.extract_strided_slice %28 {offsets = [8, 0], sizes = [2, 48], strides = [1, 1]} : vector<16x48xf32> to vector<2x48xf32>
    %113 = arith.truncf %111 : vector<2x12xf32> to vector<2x12xbf16>
    %cst_24 = arith.constant dense<0.000000e+00> : vector<2x48xf32>
    %114 = tpu.matmul %113, %29, %cst_24 {dimension_numbers = #tpu.dot_dimension_numbers<[1], [0], [0], [1], [0, 0, 1, 1], [], []>} : vector<2x12xbf16>, vector<12x48xbf16>, vector<2x48xf32> -> vector<2x48xf32>
    %115 = arith.addf %112, %114 : vector<2x48xf32>
    %116 = vector.extract_strided_slice %115 {offsets = [0, 0], sizes = [2, 36], strides = [1, 1]} : vector<2x48xf32> to vector<2x36xf32>
    %117 = arith.negf %116 : vector<2x36xf32>
    %118 = math.exp %117 : vector<2x36xf32>
    %cst_25 = arith.constant 1.000000e+00 : f32
    %119 = vector.broadcast %cst_25 : f32 to vector<2x36xf32>
    %120 = arith.addf %119, %118 : vector<2x36xf32>
    %121 = arith.divf %119, %120 : vector<2x36xf32>
    %122 = vector.extract_strided_slice %121 {offsets = [0, 0], sizes = [2, 12], strides = [1, 1]} : vector<2x36xf32> to vector<2x12xf32>
    %123 = vector.extract_strided_slice %121 {offsets = [0, 12], sizes = [2, 12], strides = [1, 1]} : vector<2x36xf32> to vector<2x12xf32>
    %124 = vector.extract_strided_slice %121 {offsets = [0, 24], sizes = [2, 12], strides = [1, 1]} : vector<2x36xf32> to vector<2x12xf32>
    %125 = vector.extract_strided_slice %115 {offsets = [0, 36], sizes = [2, 12], strides = [1, 1]} : vector<2x48xf32> to vector<2x12xf32>
    %126 = math.tanh %125 : vector<2x12xf32>
    %127 = arith.mulf %123, %109 : vector<2x12xf32>
    %128 = arith.mulf %122, %126 : vector<2x12xf32>
    %129 = arith.addf %127, %128 : vector<2x12xf32>
    %130 = math.tanh %129 : vector<2x12xf32>
    %131 = arith.mulf %124, %130 : vector<2x12xf32>
    %132 = vector.extract_strided_slice %28 {offsets = [10, 0], sizes = [2, 48], strides = [1, 1]} : vector<16x48xf32> to vector<2x48xf32>
    %133 = arith.truncf %131 : vector<2x12xf32> to vector<2x12xbf16>
    %cst_26 = arith.constant dense<0.000000e+00> : vector<2x48xf32>
    %134 = tpu.matmul %133, %29, %cst_26 {dimension_numbers = #tpu.dot_dimension_numbers<[1], [0], [0], [1], [0, 0, 1, 1], [], []>} : vector<2x12xbf16>, vector<12x48xbf16>, vector<2x48xf32> -> vector<2x48xf32>
    %135 = arith.addf %132, %134 : vector<2x48xf32>
    %136 = vector.extract_strided_slice %135 {offsets = [0, 0], sizes = [2, 36], strides = [1, 1]} : vector<2x48xf32> to vector<2x36xf32>
    %137 = arith.negf %136 : vector<2x36xf32>
    %138 = math.exp %137 : vector<2x36xf32>
    %cst_27 = arith.constant 1.000000e+00 : f32
    %139 = vector.broadcast %cst_27 : f32 to vector<2x36xf32>
    %140 = arith.addf %139, %138 : vector<2x36xf32>
    %141 = arith.divf %139, %140 : vector<2x36xf32>
    %142 = vector.extract_strided_slice %141 {offsets = [0, 0], sizes = [2, 12], strides = [1, 1]} : vector<2x36xf32> to vector<2x12xf32>
    %143 = vector.extract_strided_slice %141 {offsets = [0, 12], sizes = [2, 12], strides = [1, 1]} : vector<2x36xf32> to vector<2x12xf32>
    %144 = vector.extract_strided_slice %141 {offsets = [0, 24], sizes = [2, 12], strides = [1, 1]} : vector<2x36xf32> to vector<2x12xf32>
    %145 = vector.extract_strided_slice %135 {offsets = [0, 36], sizes = [2, 12], strides = [1, 1]} : vector<2x48xf32> to vector<2x12xf32>
    %146 = math.tanh %145 : vector<2x12xf32>
    %147 = arith.mulf %143, %129 : vector<2x12xf32>
    %148 = arith.mulf %142, %146 : vector<2x12xf32>
    %149 = arith.addf %147, %148 : vector<2x12xf32>
    %150 = math.tanh %149 : vector<2x12xf32>
    %151 = arith.mulf %144, %150 : vector<2x12xf32>
    %152 = vector.extract_strided_slice %28 {offsets = [12, 0], sizes = [2, 48], strides = [1, 1]} : vector<16x48xf32> to vector<2x48xf32>
    %153 = arith.truncf %151 : vector<2x12xf32> to vector<2x12xbf16>
    %cst_28 = arith.constant dense<0.000000e+00> : vector<2x48xf32>
    %154 = tpu.matmul %153, %29, %cst_28 {dimension_numbers = #tpu.dot_dimension_numbers<[1], [0], [0], [1], [0, 0, 1, 1], [], []>} : vector<2x12xbf16>, vector<12x48xbf16>, vector<2x48xf32> -> vector<2x48xf32>
    %155 = arith.addf %152, %154 : vector<2x48xf32>
    %156 = vector.extract_strided_slice %155 {offsets = [0, 0], sizes = [2, 36], strides = [1, 1]} : vector<2x48xf32> to vector<2x36xf32>
    %157 = arith.negf %156 : vector<2x36xf32>
    %158 = math.exp %157 : vector<2x36xf32>
    %cst_29 = arith.constant 1.000000e+00 : f32
    %159 = vector.broadcast %cst_29 : f32 to vector<2x36xf32>
    %160 = arith.addf %159, %158 : vector<2x36xf32>
    %161 = arith.divf %159, %160 : vector<2x36xf32>
    %162 = vector.extract_strided_slice %161 {offsets = [0, 0], sizes = [2, 12], strides = [1, 1]} : vector<2x36xf32> to vector<2x12xf32>
    %163 = vector.extract_strided_slice %161 {offsets = [0, 12], sizes = [2, 12], strides = [1, 1]} : vector<2x36xf32> to vector<2x12xf32>
    %164 = vector.extract_strided_slice %161 {offsets = [0, 24], sizes = [2, 12], strides = [1, 1]} : vector<2x36xf32> to vector<2x12xf32>
    %165 = vector.extract_strided_slice %155 {offsets = [0, 36], sizes = [2, 12], strides = [1, 1]} : vector<2x48xf32> to vector<2x12xf32>
    %166 = math.tanh %165 : vector<2x12xf32>
    %167 = arith.mulf %163, %149 : vector<2x12xf32>
    %168 = arith.mulf %162, %166 : vector<2x12xf32>
    %169 = arith.addf %167, %168 : vector<2x12xf32>
    %170 = math.tanh %169 : vector<2x12xf32>
    %171 = arith.mulf %164, %170 : vector<2x12xf32>
    %172 = vector.extract_strided_slice %28 {offsets = [14, 0], sizes = [2, 48], strides = [1, 1]} : vector<16x48xf32> to vector<2x48xf32>
    %173 = arith.truncf %171 : vector<2x12xf32> to vector<2x12xbf16>
    %cst_30 = arith.constant dense<0.000000e+00> : vector<2x48xf32>
    %174 = tpu.matmul %173, %29, %cst_30 {dimension_numbers = #tpu.dot_dimension_numbers<[1], [0], [0], [1], [0, 0, 1, 1], [], []>} : vector<2x12xbf16>, vector<12x48xbf16>, vector<2x48xf32> -> vector<2x48xf32>
    %175 = arith.addf %172, %174 : vector<2x48xf32>
    %176 = vector.extract_strided_slice %175 {offsets = [0, 0], sizes = [2, 36], strides = [1, 1]} : vector<2x48xf32> to vector<2x36xf32>
    %177 = arith.negf %176 : vector<2x36xf32>
    %178 = math.exp %177 : vector<2x36xf32>
    %cst_31 = arith.constant 1.000000e+00 : f32
    %179 = vector.broadcast %cst_31 : f32 to vector<2x36xf32>
    %180 = arith.addf %179, %178 : vector<2x36xf32>
    %181 = arith.divf %179, %180 : vector<2x36xf32>
    %182 = vector.extract_strided_slice %181 {offsets = [0, 0], sizes = [2, 12], strides = [1, 1]} : vector<2x36xf32> to vector<2x12xf32>
    %183 = vector.extract_strided_slice %181 {offsets = [0, 12], sizes = [2, 12], strides = [1, 1]} : vector<2x36xf32> to vector<2x12xf32>
    %184 = vector.extract_strided_slice %181 {offsets = [0, 24], sizes = [2, 12], strides = [1, 1]} : vector<2x36xf32> to vector<2x12xf32>
    %185 = vector.extract_strided_slice %175 {offsets = [0, 36], sizes = [2, 12], strides = [1, 1]} : vector<2x48xf32> to vector<2x12xf32>
    %186 = math.tanh %185 : vector<2x12xf32>
    %187 = arith.mulf %183, %169 : vector<2x12xf32>
    %188 = arith.mulf %182, %186 : vector<2x12xf32>
    %189 = arith.addf %187, %188 : vector<2x12xf32>
    %190 = math.tanh %189 : vector<2x12xf32>
    %191 = arith.mulf %184, %190 : vector<2x12xf32>
    %192 = tpu.concatenate %51, %71, %91, %111, %131, %151, %171, %191 in 1 : vector<2x12xf32>, vector<2x12xf32>, vector<2x12xf32>, vector<2x12xf32>, vector<2x12xf32>, vector<2x12xf32>, vector<2x12xf32>, vector<2x12xf32> -> vector<2x96xf32>
    %193 = arith.truncf %192 : vector<2x96xf32> to vector<2x96xbf16>
    %194 = arith.truncf %15 : vector<2x36xf32> to vector<2x36xbf16>
    %c192 = arith.constant 192 : index
    %c0_32 = arith.constant 0 : index
    %195 = vector.load %arg2[%c192, %c0_32] : memref<400x144xbf16, #tpu.memory_space<vmem>>, vector<36x24xbf16>
    %cst_33 = arith.constant dense<0.000000e+00> : vector<2x24xf32>
    %196 = tpu.matmul %194, %195, %cst_33 {dimension_numbers = #tpu.dot_dimension_numbers<[1], [0], [0], [1], [0, 0, 1, 1], [], []>} : vector<2x36xbf16>, vector<36x24xbf16>, vector<2x24xf32> -> vector<2x24xf32>
    %c240 = arith.constant 240 : index
    %c0_34 = arith.constant 0 : index
    %197 = vector.load %arg2[%c240, %c0_34] : memref<400x144xbf16, #tpu.memory_space<vmem>>, vector<96x24xbf16>
    %cst_35 = arith.constant dense<0.000000e+00> : vector<2x24xf32>
    %198 = tpu.matmul %193, %197, %cst_35 {dimension_numbers = #tpu.dot_dimension_numbers<[1], [0], [0], [1], [0, 0, 1, 1], [], []>} : vector<2x96xbf16>, vector<96x24xbf16>, vector<2x24xf32> -> vector<2x24xf32>
    %199 = arith.addf %196, %198 : vector<2x24xf32>
    %c2 = arith.constant 2 : index
    %c0_36 = arith.constant 0 : index
    %200 = vector.load %arg3[%c2, %c0_36] : memref<8x48xf32, #tpu.memory_space<vmem>>, vector<1x24xf32>
    %201 = vector.broadcast %200 : vector<1x24xf32> to vector<2x24xf32>
    %202 = arith.addf %199, %201 : vector<2x24xf32>
    %cst_37 = arith.constant 0.000000e+00 : f32
    %203 = vector.broadcast %cst_37 : f32 to vector<2x24xf32>
    %204 = arith.maximumf %202, %203 : vector<2x24xf32>
    %205 = arith.truncf %204 : vector<2x24xf32> to vector<2x24xbf16>
    %c336 = arith.constant 336 : index
    %c0_38 = arith.constant 0 : index
    %206 = vector.load %arg2[%c336, %c0_38] : memref<400x144xbf16, #tpu.memory_space<vmem>>, vector<24x30xbf16>
    %cst_39 = arith.constant dense<0.000000e+00> : vector<2x30xf32>
    %207 = tpu.matmul %205, %206, %cst_39 {dimension_numbers = #tpu.dot_dimension_numbers<[1], [0], [0], [1], [0, 0, 1, 1], [], []>} : vector<2x24xbf16>, vector<24x30xbf16>, vector<2x30xf32> -> vector<2x30xf32>
    %c3 = arith.constant 3 : index
    %c0_40 = arith.constant 0 : index
    %208 = vector.load %arg3[%c3, %c0_40] : memref<8x48xf32, #tpu.memory_space<vmem>>, vector<1x30xf32>
    %209 = vector.broadcast %208 : vector<1x30xf32> to vector<2x30xf32>
    %210 = arith.addf %207, %209 : vector<2x30xf32>
    %cst_41 = arith.constant 0.000000e+00 : f32
    %211 = vector.broadcast %cst_41 : f32 to vector<2x30xf32>
    %212 = arith.maximumf %210, %211 : vector<2x30xf32>
    %213 = arith.truncf %212 : vector<2x30xf32> to vector<2x30xbf16>
    %c368 = arith.constant 368 : index
    %c0_42 = arith.constant 0 : index
    %214 = vector.load %arg2[%c368, %c0_42] : memref<400x144xbf16, #tpu.memory_space<vmem>>, vector<30x1xbf16>
    %cst_43 = arith.constant dense<0.000000e+00> : vector<2x1xf32>
    %215 = tpu.matmul %213, %214, %cst_43 {dimension_numbers = #tpu.dot_dimension_numbers<[1], [0], [0], [1], [0, 0, 1, 1], [], []>} : vector<2x30xbf16>, vector<30x1xbf16>, vector<2x1xf32> -> vector<2x1xf32>
    %c4 = arith.constant 4 : index
    %c0_44 = arith.constant 0 : index
    %216 = vector.load %arg3[%c4, %c0_44] : memref<8x48xf32, #tpu.memory_space<vmem>>, vector<1x1xf32>
    %217 = vector.broadcast %216 : vector<1x1xf32> to vector<2x1xf32>
    %218 = arith.addf %215, %217 : vector<2x1xf32>
    %c0_45 = arith.constant 0 : index
    %c0_46 = arith.constant 0 : index
    %219 = vector.load %arg4[%c0_45, %c0_46] : memref<2x1xf32, #tpu.memory_space<vmem>>, vector<2x1xf32>
    tpu.vector_store %arg4[%c0_45, %c0_46], %218 {strides = array<i32>} : memref<2x1xf32, #tpu.memory_space<vmem>>, vector<2x1xf32>,
    return
  }
}

</mosaic_0001>

<bundles_post_ra>
// kernel: critic_forward.1
= control target key start
LH: loop header
LB: loop body
LE: loop exit
PB: predicated region body
PF: predicated region fallthrough
CT: control target
= control target key end

     0   :  { %v1598_v0 = vmov 0   ;;  %v1599_v2 = vmov 0.0   ;;  %vm1600_vm0 = vmmov 0   ;;  %v227_v5 = vlaneseq  ;;  %s1601_s24 = smov 92   ;;  %s1602_s25 = smov 12   ;;  %s1936_s1 = inlined_call_operand.vmem [shape: s32[16,1], index: 1, kind: input, shape index: {}]   ;;  %s1937_s2 = inlined_call_operand.vmem [shape: bf16[400,144], index: 2, kind: input, shape index: {}]   ;;  %s1938_s3 = inlined_call_operand.vmem [shape: f32[8,48], index: 3, kind: input, shape index: {}]   ;;  %s1939_s0 = inlined_call_operand.vmem [shape: f32[2,147], index: 0, kind: input, shape index: {}]   ;;  %s1940_s4 = inlined_call_operand.vmem [shape: f32[2,1], index: 4, kind: output, shape index: {}]  }
   0x1   :  { %1489 = vset.pattern.permute.xlu0 %v1598_v0  ;;  %v225_v1 = vld [vmem:[%s1936_s1] sm:$0xff]  ;;  %1380 = vmatprep.subr.bf16.mxu1 %v1599_v2  ;;  %v226_v3 = vld [vmem:[%s1936_s1 + $0x8] sm:$0xff]  ;;  %v1491_v8 = vld [vmem:[%s1937_s2 + $0xb0] ss:$8 sps:$4 sm:$0x3f]   ;;  %vm309_vm2 = vcmask 1045504  }
   0x2   :  { %230 = vperm.xlu0 %1489, %v225_v1   ;;  %v1490_v4 = vld [vmem:[%s1937_s2 + $0xa0] ss:$8 sps:$4 sm:$0xff]   ;;  %1382 = vmatprep.mubr.msk.bf16.mxu1 %vm1600_vm0, %v1599_v2  ;;  %v228_v6 = vand.u32 127, %v227_v5  ;;  %vm253_vm4 = vcmask 130048   ;;  %v1654_v13 = vsel %vm309_vm2, %v1491_v8, 0  ;;  %s1603_s26 = smov 104  }
   0x3   :  { %1381 = vmatpush3.bf16.msra.mxu1 %v1490_v4  ;;  %v1306_v16 = vld [vmem:[%s1938_s3 + $0x1] ss:$0 sm:$0xff]  ;;  %vm305_vm5 = vcmask 97280   ;;  %vm146_vm6 = vcmask 154624   ;;  %vm150_vm7 = vcmask 1040384   ;;  %vm151_vm8 = vcmask 1041408  }
   0x4   :  { %1386 = vmatprep.subr.bf16.mxu1 %v1599_v2  ;;  %vm209_vm9 = vcmask 752640   ;;  %s1607_s27 = smov 48   ;;  %s1608_s28 = smov 116   ;;  %vm965_vm10 = vcmask 293888   ;;  %vm963_vm11 = vcmask 195584   ;;  %vm967_vm12 = vcmask 392192  }
   0x5   :  { %s1609_s7 = smov 36   ;;  %s1610_s13 = smov 60   ;;  %vm969_vm13 = vcmask 490496   ;;  %vm971_vm14 = vcmask 588800   ;;  %vm973_vm15 = vcmask 687104   ;;  %vm1163_vm2 = vcmask 1043456  }
   0x6   :  { %233 = vperm.xlu0 %1489, %v226_v3  }
  0x81   :  { %v231_v7 = vpop.permute.xlu0 %230 }
  0x82   :  { %vm235_vm1 = vcmp.eq.s32.totalorder %v231_v7, %v228_v6 }
  0x83   :  { %v237_v10 = vsel %vm235_vm1, 1.0, %v1599_v2  ;;  %vm1030_vm1 = vcmask 785408  }
  0x85   :  { %v234_v9 = vpop.permute.xlu0 %233 }
  0x86   :  { %vm236_vm3 = vcmp.eq.s32.totalorder %v234_v9, %v228_v6 }
  0x87   :  { %v238_v11 = vsel %vm236_vm3, 1.0, %v1599_v2  ;;  %vm1233_vm3 = vcmask 1046528  }
  0x88   :  { %v239_v12 = vpack.c.bf16 %v238_v11, %v237_v10 }
  0x8a   :  { %1383 = vmatmul.mubr.msk.bf16.vlgmr.msra.gmra.mrb[0].mxu1 %vm253_vm4, %v239_v12  ;;  %vm1277_vm4 = vcmask 1024  }
  0x8b   :  { %1387 = vmatpush3.bf16.msra.mxu1 %v1654_v13  ;;  %1388 = vmatprep.mubr.msk.bf16.mxu1 %vm1600_vm0, %v1599_v2 }
  0x8c   :  { %1392 = vmatprep.subr.bf16.mxu1 %v1599_v2 }
  0x92   :  { %1389 = vmatmul.mubr.bf16.vlgmr.msra.gmra.mrb[4].mxu1 %v1598_v0 }
  0x93   :  { %1393 = vmatpush3.bf16.msra.mxu1 %v1654_v13  ;;  %1394 = vmatprep.mubr.msk.bf16.mxu1 %vm1600_vm0, %v1599_v2 }
  0x94   :  { %1398 = vmatprep.subr.bf16.mxu1 %v1599_v2 }
 0x15d   :  { %v291_v14 = vpop.f32.mrb[0].mxu1 }
 0x15e   :  { %v1384_v15 = vpop.f32.mrb[1].mxu1  ;;  %v1669_v20 = vadd.f32 %v1306_v16, %v291_v14 }
 0x15f   :  { %v294_v17 = vpop.f32.mrb[2].mxu1 }
 0x160   :  { %v1667_v18 = vadd.f32 %v1306_v16, %v294_v17  ;;  %v1385_v19 = vpop.f32.mrb[3].mxu1 }
 0x165   :  { %v347_v21 = vpop.f32.mrb[4].mxu1 }
 0x166   :  { %v353_v22 = vadd.f32 %v347_v21, %v1669_v20  ;;  %v1390_v23 = vpop.f32.mrb[5].mxu1 }
 0x167   :  { %v350_v24 = vpop.f32.mrb[6].mxu1 }
 0x168   :  { %1534 = vtanh.f32 %v353_v22  ;;  %v1391_v25 = vpop.f32.mrb[7].mxu1  ;;  %v1310_v27 = vmul.f32 -1.442695, %v353_v22 }
 0x16a   :  { %1536 = vpow2.f32 %v1310_v27 }
 0x172   :  { %v1535_v26 = vpop.eup %1534 }
 0x173   :  { %363 = vrot.lane.b32.xlu1 %v1535_v26, %s1601_s24 }
 0x174   :  { %v1537_v28 = vpop.eup %1536 }
 0x175   :  { %v357_v29 = vadd.f32 1.0, %v1537_v28 }
 0x177   :  { %1538 = vrcp.f32 %v357_v29 }
 0x181   :  { %v1539_v30 = vpop.eup %1538 }
 0x182   :  { %v361_v33 = vmul.f32 0.0, %v1539_v30 }
 0x1e5   :  { %v364_v31 = vpop.permute.xlu1 %363 }
 0x1e6   :  { %v366_v32 = vmul.f32 %v1539_v30, %v364_v31 }
 0x1e8   :  { %368 = vrot.lane.b32.xlu1 %v366_v32, %s1602_s25 }
 0x25a   :  { %v369_v34 = vpop.permute.xlu1 %368 }
 0x25b   :  { %v371_v35 = vadd.f32 %v369_v34, %v361_v33 }
 0x25d   :  { %1540 = vtanh.f32 %v371_v35  ;;  %v437_v54 = vrot.slane %v371_v35, 6 }
 0x267   :  { %v1541_v36 = vpop.eup %1540 }
 0x268   :  { %374 = vrot.lane.b32.xlu0 %v1541_v36, %s1602_s25 }
 0x2da   :  { %v375_v37 = vpop.permute.xlu0 %374 }
 0x2db   :  { %v1675_v38 = vmul.f32 %v1539_v30, %v375_v37 }
 0x2dd   :  { %v378_v39 = vpack.c.bf16 %v1675_v38, %v1675_v38 }
 0x2df   :  { %380 = vrot.lane.b32.xlu1 %v378_v39, %s1603_s26 }
 0x351   :  { %v381_v40 = vpop.permute.xlu1 %380 }
 0x352   :  { %1395 = vmatmul.mubr.msk.bf16.vlgmr.msra.gmra.mrb[8].mxu1 %vm305_vm5, %v381_v40 }
 0x353   :  { %1399 = vmatpush3.bf16.msra.mxu1 %v1654_v13  ;;  %1400 = vmatprep.mubr.msk.bf16.mxu1 %vm1600_vm0, %v1599_v2 }
 0x354   :  { %1404 = vmatprep.subr.bf16.mxu1 %v1599_v2 }
 0x425   :  { %v419_v41 = vpop.f32.mrb[8].mxu1 }
 0x426   :  { %v426_v42 = vrot.slane %v419_v41, 6  ;;  %v1396_v43 = vpop.f32.mrb[9].mxu1 }
 0x427   :  { %v422_v44 = vpop.f32.mrb[10].mxu1 }
 0x428   :  { %v428_v45 = vadd.f32 %v426_v42, %v1669_v20  ;;  %v1397_v46 = vpop.f32.mrb[11].mxu1 }
 0x42a   :  { %1542 = vtanh.f32 %v428_v45  ;;  %v1312_v48 = vmul.f32 -1.442695, %v428_v45 }
 0x42c   :  { %1544 = vpow2.f32 %v1312_v48 }
 0x434   :  { %v1543_v47 = vpop.eup %1542 }
 0x435   :  { %441 = vrot.lane.b32.xlu0 %v1543_v47, %s1601_s24 }
 0x436   :  { %v1545_v49 = vpop.eup %1544 }
 0x437   :  { %v432_v50 = vadd.f32 1.0, %v1545_v49 }
 0x439   :  { %1546 = vrcp.f32 %v432_v50 }
 0x443   :  { %v1547_v51 = vpop.eup %1546 }
 0x444   :  { %v439_v55 = vmul.f32 %v1547_v51, %v437_v54 }
 0x4a7   :  { %v442_v52 = vpop.permute.xlu0 %441 }
 0x4a8   :  { %v444_v53 = vmul.f32 %v1547_v51, %v442_v52 }
 0x4aa   :  { %446 = vrot.lane.b32.xlu1 %v444_v53, %s1602_s25 }
 0x51c   :  { %v447_v56 = vpop.permute.xlu1 %446 }
 0x51d   :  { %v449_v57 = vadd.f32 %v447_v56, %v439_v55 }
 0x51f   :  { %1548 = vtanh.f32 %v449_v57  ;;  %v516_v15 = vrot.slane %v449_v57, 6 }
 0x529   :  { %v1549_v58 = vpop.eup %1548 }
 0x52a   :  { %452 = vrot.lane.b32.xlu0 %v1549_v58, %s1602_s25 }
 0x59c   :  { %v453_v59 = vpop.permute.xlu0 %452 }
 0x59d   :  { %v1689_v60 = vmul.f32 %v1547_v51, %v453_v59 }
 0x59f   :  { %v456_v61 = vpack.c.bf16 %v1689_v60, %v1689_v60 }
 0x5a1   :  { %v458_v62 = vrot.slane %v456_v61, 1 }
 0x5a3   :  { %459 = vrot.lane.b32.xlu1 %v458_v62, %s1603_s26 }
 0x615   :  { %v460_v63 = vpop.permute.xlu1 %459 }
 0x616   :  { %1401 = vmatmul.mubr.msk.bf16.vlgmr.msra.gmra.mrb[12].mxu1 %vm305_vm5, %v460_v63 }
 0x617   :  { %1405 = vmatpush3.bf16.msra.mxu1 %v1654_v13  ;;  %1406 = vmatprep.mubr.msk.bf16.mxu1 %vm1600_vm0, %v1599_v2 }
 0x618   :  { %1410 = vmatprep.subr.bf16.mxu1 %v1599_v2 }
 0x6e9   :  { %v498_v0 = vpop.f32.mrb[12].mxu1 }
 0x6ea   :  { %v505_v1 = vrot.slane %v498_v0, 4  ;;  %v1402_v3 = vpop.f32.mrb[13].mxu1 }
 0x6eb   :  { %v501_v4 = vpop.f32.mrb[14].mxu1 }
 0x6ec   :  { %v507_v5 = vadd.f32 %v505_v1, %v1669_v20  ;;  %v1403_v6 = vpop.f32.mrb[15].mxu1  ;;  %v1492_v4 = vld [vmem:[%s1937_s2 + $0x4] ss:$8 sps:$4 sm:$0xff]  }
 0x6ed   :  { %v1495_v6 = vld [vmem:[%s1937_s2 + $0x14] ss:$8 sps:$4 sm:$0xff]   ;;  %160 = vmatprep.subr.bf16.mxu0 %v1492_v4 }
 0x6ee   :  { %1550 = vtanh.f32 %v507_v5  ;;  %v1314_v8 = vmul.f32 -1.442695, %v507_v5  ;;  %v1494_v5 = vld [vmem:[%s1937_s2] ss:$8 sps:$4 sm:$0xff]  }
 0x6ef   :  { %161 = vmatpush1.bf16.msra.mxu0 %v1494_v5 }
 0x6f0   :  { %1552 = vpow2.f32 %v1314_v8  ;;  %162 = vmatprep.subr.bf16.mxu0 %v1495_v6  ;;  %v1498_v8 = vld [vmem:[%s1937_s2 + $0x24] ss:$8 sps:$4 sm:$0xff]  }
 0x6f8   :  { %v1551_v7 = vpop.eup %1550 }
 0x6f9   :  { %520 = vrot.lane.b32.xlu0 %v1551_v7, %s1601_s24  ;;  %v1497_v7 = vld [vmem:[%s1937_s2 + $0x10] ss:$8 sps:$4 sm:$0xff]  }
 0x6fa   :  { %v1553_v9 = vpop.eup %1552  ;;  %163 = vmatpush1.bf16.msra.mxu0 %v1497_v7 }
 0x6fb   :  { %v511_v10 = vadd.f32 1.0, %v1553_v9  ;;  %v1500_v9 = vld [vmem:[%s1937_s2 + $0x20] ss:$8 sps:$4 sm:$0xff]   ;;  %164 = vmatprep.subr.bf16.mxu0 %v1498_v8 }
 0x6fd   :  { %1554 = vrcp.f32 %v511_v10  ;;  %v1283_v10 = vld.sshfl [vmem:[%s1939_s0] sm:$0x33 pattern:$0x76325410]  ;;  %s1606_s0 = smov 24  }
 0x6fe   :  { %165 = vmatpush1.bf16.msra.mxu0 %v1500_v9 }
 0x707   :  { %v1555_v11 = vpop.eup %1554 }
 0x708   :  { %v518_v16 = vmul.f32 %v1555_v11, %v516_v15 }
 0x76b   :  { %v521_v12 = vpop.permute.xlu0 %520 }
 0x76c   :  { %v523_v14 = vmul.f32 %v1555_v11, %v521_v12  ;;  %v1501_v12 = vld [vmem:[%s1937_s2 + $0x34] ss:$8 sps:$4 sm:$0xff]  }
 0x76d   :  { %166 = vmatprep.subr.bf16.mxu0 %v1501_v12 }
 0x76e   :  { %525 = vrot.lane.b32.xlu1 %v523_v14, %s1602_s25  ;;  %v27_v14 = vcombine.high %v1283_v10, %v1283_v10 }
 0x770   :  { %v31_v15 = vpack.c.bf16 %v27_v14, %v27_v14 }
 0x772   :  { %1304 = vmatprep.mubr.msk.bf16.mxu0 %vm146_vm6, %v31_v15 }
 0x7e0   :  { %v526_v17 = vpop.permute.xlu1 %525 }
 0x7e1   :  { %v528_v19 = vadd.f32 %v526_v17, %v518_v16  ;;  %v1503_v16 = vld [vmem:[%s1937_s2 + $0x30] ss:$8 sps:$4 sm:$0xff]   ;;  %v1504_v17 = vld [vmem:[%s1937_s2 + $0x44] ss:$8 sps:$4 sm:$0xff]  }
 0x7e2   :  { %167 = vmatpush1.bf16.msra.mxu0 %v1503_v16 }
 0x7e3   :  { %1556 = vtanh.f32 %v528_v19  ;;  %v595_v41 = vrot.slane %v528_v19, 6  ;;  %v1506_v19 = vld [vmem:[%s1937_s2 + $0x40] ss:$8 sps:$4 sm:$0xff]   ;;  %168 = vmatprep.subr.bf16.mxu0 %v1504_v17 }
 0x7e6   :  { %169 = vmatpush1.bf16.msra.mxu0 %v1506_v19 }
 0x7ed   :  { %v1557_v21 = vpop.eup %1556 }
 0x7ee   :  { %531 = vrot.lane.b32.xlu0 %v1557_v21, %s1602_s25  ;;  %v1507_v21 = vld [vmem:[%s1937_s2 + $0x54] ss:$8 sps:$4 sm:$0xff]  }
 0x7ef   :  { %170 = vmatprep.subr.bf16.mxu0 %v1507_v21 }
 0x860   :  { %v532_v22 = vpop.permute.xlu0 %531 }
 0x861   :  { %v1703_v23 = vmul.f32 %v1555_v11, %v532_v22  ;;  %v1509_v22 = vld [vmem:[%s1937_s2 + $0x50] ss:$8 sps:$4 sm:$0xff]  }
 0x862   :  { %171 = vmatpush1.bf16.msra.mxu0 %v1509_v22 }
 0x863   :  { %v535_v24 = vpack.c.bf16 %v1703_v23, %v1703_v23 }
 0x865   :  { %v537_v25 = vrot.slane %v535_v24, 2  ;;  %v1510_v24 = vld [vmem:[%s1937_s2 + $0x64] ss:$8 sps:$4 sm:$0xff]  }
 0x866   :  { %172 = vmatprep.subr.bf16.mxu0 %v1510_v24 }
 0x867   :  { %538 = vrot.lane.b32.xlu1 %v537_v25, %s1603_s26  ;;  %v1512_v25 = vld [vmem:[%s1937_s2 + $0x60] ss:$8 sps:$4 sm:$0xff]  }
 0x868   :  { %173 = vmatpush1.bf16.msra.mxu0 %v1512_v25 }
 0x8d9   :  { %v539_v26 = vpop.permute.xlu1 %538 }
 0x8da   :  { %1407 = vmatmul.mubr.msk.bf16.vlgmr.msra.gmra.mrb[16].mxu1 %vm305_vm5, %v539_v26  ;;  %v1513_v26 = vld [vmem:[%s1937_s2 + $0x74] ss:$8 sps:$4 sm:$0xff]  }
 0x8db   :  { %1411 = vmatpush3.bf16.msra.mxu1 %v1654_v13  ;;  %1412 = vmatprep.mubr.msk.bf16.mxu1 %vm1600_vm0, %v1599_v2 }
 0x8dc   :  { %1422 = vmatprep.subr.bf16.mxu1 %v1599_v2  ;;  %174 = vmatprep.subr.bf16.mxu0 %v1513_v26 }
 0x9ad   :  { %v577_v27 = vpop.f32.mrb[16].mxu1 }
 0x9ae   :  { %v584_v28 = vrot.slane %v577_v27, 2  ;;  %v1408_v29 = vpop.f32.mrb[17].mxu1  ;;  %v50_v27 = vld [vmem:[%s1937_s2 + $0x90] sm:$0x33] }
 0x9af   :  { %v580_v30 = vpop.f32.mrb[18].mxu1 }
 0x9b0   :  { %v586_v31 = vadd.f32 %v584_v28, %v1669_v20  ;;  %v1409_v32 = vpop.f32.mrb[19].mxu1  ;;  %v1604_v28 = vmov 65535   ;;  %v1515_v30 = vld [vmem:[%s1937_s2 + $0x70] ss:$8 sps:$4 sm:$0xff]  }
 0x9b1   :  { %v152_v29 = vsel %vm150_vm7, 4294967295, %v1604_v28  ;;  %v1303_v32 = vcombine.high %v50_v27, %v50_v27  ;;  %175 = vmatpush1.bf16.msra.mxu0 %v1515_v30 }
 0x9b2   :  { %1558 = vtanh.f32 %v586_v31  ;;  %v1316_v34 = vmul.f32 -1.442695, %v586_v31  ;;  %v1516_v31 = vld [vmem:[%s1937_s2 + $0x84] ss:$8 sps:$4 sm:$0xff]  }
 0x9b3   :  { %176 = vmatprep.subr.bf16.mxu0 %v1516_v31 }
 0x9b4   :  { %1560 = vpow2.f32 %v1316_v34  ;;  %v1518_v34 = vld [vmem:[%s1937_s2 + $0x80] ss:$8 sps:$4 sm:$0xff]  }
 0x9b5   :  { %177 = vmatpush1.bf16.msra.mxu0 %v1518_v34 }
 0x9bc   :  { %v1559_v33 = vpop.eup %1558 }
 0x9bd   :  { %599 = vrot.lane.b32.xlu0 %v1559_v33, %s1601_s24  ;;  %v153_v33 = vsel %vm151_vm8, %v152_v29, 0 }
 0x9be   :  { %v1561_v35 = vpop.eup %1560 }
 0x9bf   :  { %v590_v36 = vadd.f32 1.0, %v1561_v35  ;;  %v1302_v35 = vcombine.low %v50_v27, %v50_v27 }
 0x9c1   :  { %1562 = vrcp.f32 %v590_v36  ;;  %v158_v36 = vand.u32 %v1303_v32, %v153_v33 }
 0x9c3   :  { %178 = vmatprep.subr.bf16.mxu0 %v158_v36 }
 0x9cb   :  { %v1563_v37 = vpop.eup %1562 }
 0x9cc   :  { %v597_v42 = vmul.f32 %v1563_v37, %v595_v41 }
 0xa2f   :  { %v600_v39 = vpop.permute.xlu0 %599 }
 0xa30   :  { %v602_v40 = vmul.f32 %v1563_v37, %v600_v39  ;;  %v30_v39 = vpack.c.bf16 %v1283_v10, %v1283_v10 }
 0xa32   :  { %604 = vrot.lane.b32.xlu1 %v602_v40, %s1602_s25 }
 0xaa4   :  { %v605_v43 = vpop.permute.xlu1 %604 }
 0xaa5   :  { %v607_v44 = vadd.f32 %v605_v43, %v597_v42 }
 0xaa7   :  { %1564 = vtanh.f32 %v607_v44  ;;  %v671_v63 = vrot.slane %v607_v44, 6 }
 0xab1   :  { %v1565_v20 = vpop.eup %1564 }
 0xab2   :  { %610 = vrot.lane.b32.xlu0 %v1565_v20, %s1602_s25 }
 0xb24   :  { %v611_v45 = vpop.permute.xlu0 %610 }
 0xb25   :  { %v1717_v46 = vmul.f32 %v1563_v37, %v611_v45  ;;  %v155_v37 = vand.u32 %v1302_v35, %v153_v33 }
 0xb27   :  { %v614_v47 = vpack.c.bf16 %v1717_v46, %v1717_v46  ;;  %179 = vmatpush1.bf16.msra.mxu0 %v155_v37 }
 0xb28   :  { %1416 = vmatprep.subr.bf16.mxu0 %v1599_v2 }
 0xb29   :  { %v616_v48 = vrot.slane %v614_v47, 3 }
 0xb2a   :  { %193 = vmatmul.mubr.bf16.vlgmr.msra.gmra.mrb[0].mxu0 %v30_v39 }
 0xb2b   :  { %617 = vrot.lane.b32.xlu1 %v616_v48, %s1603_s26  ;;  %1417 = vmatpush3.bf16.msra.mxu0 %v1654_v13 }
 0xb2c   :  { %1418 = vmatprep.mubr.msk.bf16.mxu0 %vm1600_vm0, %v1599_v2  ;;  %1428 = vmatprep.subr.bf16.mxu0 %v1599_v2 }
 0xb9d   :  { %v618_v49 = vpop.permute.xlu1 %617 }
 0xb9e   :  { %1413 = vmatmul.mubr.msk.bf16.vlgmr.msra.gmra.mrb[20].mxu1 %vm305_vm5, %v618_v49 }
 0xb9f   :  { %1423 = vmatpush3.bf16.msra.mxu1 %v1654_v13  ;;  %1424 = vmatprep.mubr.msk.bf16.mxu1 %vm1600_vm0, %v1599_v2 }
 0xba0   :  { %1434 = vmatprep.subr.bf16.mxu1 %v1599_v2 }
 0xbfd   :  { %v1815_v44 = vpop.f32.mrb[0].mxu0 }
 0xbfe   :  { %v1817_v20 = vpop.f32.mrb[1].mxu0 }
 0xbff   :  { %v198_v45 = vpop.f32.mrb[2].mxu0 }
 0xc00   :  { %v199_v47 = vpop.f32.mrb[3].mxu0 }
 0xc71   :  { %v656_v50 = vpop.f32.mrb[20].mxu1 }
 0xc72   :  { %v662_v51 = vadd.f32 %v656_v50, %v1667_v18  ;;  %v1414_v52 = vpop.f32.mrb[21].mxu1 }
 0xc73   :  { %v659_v53 = vpop.f32.mrb[22].mxu1 }
 0xc74   :  { %1566 = vtanh.f32 %v662_v51  ;;  %v1415_v54 = vpop.f32.mrb[23].mxu1  ;;  %v1318_v56 = vmul.f32 -1.442695, %v662_v51 }
 0xc76   :  { %1568 = vpow2.f32 %v1318_v56 }
 0xc7e   :  { %v1567_v55 = vpop.eup %1566 }
 0xc7f   :  { %675 = vrot.lane.b32.xlu0 %v1567_v55, %s1601_s24 }
 0xc80   :  { %v1569_v57 = vpop.eup %1568 }
 0xc81   :  { %v666_v58 = vadd.f32 1.0, %v1569_v57 }
 0xc83   :  { %1570 = vrcp.f32 %v666_v58 }
 0xc8d   :  { %v1729_v59 = vpop.eup %1570 }
 0xc8e   :  { %v673_v0 = vmul.f32 %v1729_v59, %v671_v63 }
 0xcf1   :  { %v676_v61 = vpop.permute.xlu0 %675 }
 0xcf2   :  { %v678_v62 = vmul.f32 %v1729_v59, %v676_v61 }
 0xcf4   :  { %680 = vrot.lane.b32.xlu1 %v678_v62, %s1602_s25 }
 0xd66   :  { %v681_v1 = vpop.permute.xlu1 %680 }
 0xd67   :  { %v1734_v3 = vadd.f32 %v681_v1, %v673_v0 }
 0xd69   :  { %1572 = vtanh.f32 %v1734_v3  ;;  %v749_v61 = vrot.slane %v1734_v3, 6 }
 0xd73   :  { %v1573_v11 = vpop.eup %1572 }
 0xd74   :  { %686 = vrot.lane.b32.xlu0 %v1573_v11, %s1602_s25 }
 0xde6   :  { %v687_v40 = vpop.permute.xlu0 %686 }
 0xde7   :  { %v1805_v41 = vmul.f32 %v1729_v59, %v687_v40 }
 0xde9   :  { %v690_v42 = vpack.c.bf16 %v1805_v41, %v1805_v41 }
 0xdeb   :  { %692 = vrot.lane.b32.xlu1 %v690_v42, %s1603_s26 }
 0xe5d   :  { %v693_v43 = vpop.permute.xlu1 %692 }
 0xe5e   :  { %1419 = vmatmul.mubr.msk.bf16.vlgmr.msra.gmra.mrb[4].mxu0 %vm305_vm5, %v693_v43 }
 0xe5f   :  { %1429 = vmatpush3.bf16.msra.mxu0 %v1654_v13  ;;  %1430 = vmatprep.mubr.msk.bf16.mxu0 %vm1600_vm0, %v1599_v2 }
 0xe60   :  { %1450 = vmatprep.subr.bf16.mxu0 %v1599_v2 }
 0xf31   :  { %v731_v48 = vpop.f32.mrb[4].mxu0 }
 0xf32   :  { %v738_v49 = vrot.slane %v731_v48, 6  ;;  %v1420_v50 = vpop.f32.mrb[5].mxu0 }
 0xf33   :  { %v734_v51 = vpop.f32.mrb[6].mxu0 }
 0xf34   :  { %v740_v52 = vadd.f32 %v738_v49, %v1667_v18  ;;  %v1421_v53 = vpop.f32.mrb[7].mxu0 }
 0xf36   :  { %1574 = vtanh.f32 %v740_v52  ;;  %v1320_v54 = vmul.f32 -1.442695, %v740_v52  ;;  %v1522_v52 = vld [vmem:[%s1937_s2 + $0xd0] ss:$8 sps:$4 sm:$0xff]  }
 0xf38   :  { %1576 = vpow2.f32 %v1320_v54 }
 0xf40   :  { %v1575_v13 = vpop.eup %1574 }
 0xf41   :  { %753 = vrot.lane.b32.xlu0 %v1575_v13, %s1601_s24 }
 0xf42   :  { %v1577_v55 = vpop.eup %1576 }
 0xf43   :  { %v744_v56 = vadd.f32 1.0, %v1577_v55 }
 0xf45   :  { %1578 = vrcp.f32 %v744_v56 }
 0xf4f   :  { %v1579_v57 = vpop.eup %1578 }
 0xf50   :  { %v751_v62 = vmul.f32 %v1579_v57, %v749_v61 }
 0xfb3   :  { %v754_v58 = vpop.permute.xlu0 %753 }
 0xfb4   :  { %v756_v59 = vmul.f32 %v1579_v57, %v754_v58 }
 0xfb6   :  { %758 = vrot.lane.b32.xlu1 %v756_v59, %s1602_s25 }
0x1028   :  { %v759_v63 = vpop.permute.xlu1 %758 }
0x1029   :  { %v761_v0 = vadd.f32 %v759_v63, %v751_v62  ;;  %v1524_v62 = vld [vmem:[%s1937_s2 + $0xf0] ss:$8 sps:$4 sm:$0xff]  }
0x102b   :  { %1580 = vtanh.f32 %v761_v0  ;;  %v828_v25 = vrot.slane %v761_v0, 6  ;;  %v1525_v0 = vld [vmem:[%s1937_s2 + $0x100] ss:$8 sps:$4 sm:$0xff]  }
0x1035   :  { %v1581_v1 = vpop.eup %1580 }
0x1036   :  { %764 = vrot.lane.b32.xlu0 %v1581_v1, %s1602_s25  ;;  %v931_v1 = vrot.slane %v1689_v60, 2  ;;  %v1527_v60 = vld [vmem:[%s1937_s2 + $0x120] ss:$8 sps:$4 sm:$0xff]  }
0x10a8   :  { %v765_v4 = vpop.permute.xlu0 %764 }
0x10a9   :  { %v1824_v5 = vmul.f32 %v1579_v57, %v765_v4  ;;  %v939_v4 = vrot.slane %v1717_v46, 6  ;;  %v1528_v46 = vld [vmem:[%s1937_s2 + $0x130] ss:$8 sps:$4 sm:$0xff]  }
0x10ab   :  { %v768_v6 = vpack.c.bf16 %v1824_v5, %v1824_v5 }
0x10ad   :  { %v770_v7 = vrot.slane %v768_v6, 1  ;;  %v948_v6 = vrot.slane %v1824_v5, 2 }
0x10af   :  { %771 = vrot.lane.b32.xlu1 %v770_v7, %s1603_s26 }
0x1121   :  { %v772_v8 = vpop.permute.xlu1 %771 }
0x1122   :  { %1425 = vmatmul.mubr.msk.bf16.vlgmr.msra.gmra.mrb[24].mxu1 %vm305_vm5, %v772_v8  ;;  %v1529_v8 = vld [vmem:[%s1937_s2 + $0x140] ss:$8 sps:$4 sm:$0xff]  }
0x1123   :  { %1446 = vmatprep.mubr.msk.bf16.mxu1 %vm1600_vm0, %v1599_v2  ;;  %1435 = vmatpush3.bf16.msra.mxu1 %v1524_v62 }
0x1124   :  { %1436 = vmatprep.subr.bf16.mxu1 %v1599_v2 }
0x1127   :  { %1437 = vmatpush3.bf16.msra.mxu1 %v1525_v0 }
0x1128   :  { %1438 = vmatprep.subr.bf16.mxu1 %v1599_v2 }
0x11f5   :  { %v810_v3 = vpop.f32.mrb[24].mxu1 }
0x11f6   :  { %v817_v9 = vrot.slane %v810_v3, 4  ;;  %v1426_v10 = vpop.f32.mrb[25].mxu1  ;;  %v1305_v3 = vld [vmem:[%s1938_s3] ss:$0 sm:$0xff] }
0x11f7   :  { %v813_v11 = vpop.f32.mrb[26].mxu1 }
0x11f8   :  { %v819_v12 = vadd.f32 %v817_v9, %v1667_v18  ;;  %v1427_v14 = vpop.f32.mrb[27].mxu1 }
0x11fa   :  { %1582 = vtanh.f32 %v819_v12  ;;  %v1322_v16 = vmul.f32 -1.442695, %v819_v12 }
0x11fc   :  { %1584 = vpow2.f32 %v1322_v16 }
0x1204   :  { %v1583_v15 = vpop.eup %1582 }
0x1205   :  { %832 = vrot.lane.b32.xlu0 %v1583_v15, %s1601_s24 }
0x1206   :  { %v1585_v17 = vpop.eup %1584 }
0x1207   :  { %v823_v19 = vadd.f32 1.0, %v1585_v17 }
0x1209   :  { %1586 = vrcp.f32 %v823_v19  ;;  %v936_v19 = vrot.slane %v1703_v23, 4 }
0x1213   :  { %v1587_v21 = vpop.eup %1586 }
0x1214   :  { %v830_v26 = vmul.f32 %v1587_v21, %v828_v25 }
0x1277   :  { %v833_v22 = vpop.permute.xlu0 %832 }
0x1278   :  { %v835_v24 = vmul.f32 %v1587_v21, %v833_v22 }
0x127a   :  { %837 = vrot.lane.b32.xlu1 %v835_v24, %s1602_s25 }
0x12ec   :  { %v838_v27 = vpop.permute.xlu1 %837 }
0x12ed   :  { %v840_v28 = vadd.f32 %v838_v27, %v830_v26 }
0x12ef   :  { %1588 = vtanh.f32 %v840_v28  ;;  %v907_v53 = vrot.slane %v840_v28, 6 }
0x12f9   :  { %v1589_v29 = vpop.eup %1588 }
0x12fa   :  { %843 = vrot.lane.b32.xlu0 %v1589_v29, %s1602_s25 }
0x136c   :  { %v844_v30 = vpop.permute.xlu0 %843 }
0x136d   :  { %v846_v31 = vmul.f32 %v1587_v21, %v844_v30 }
0x136f   :  { %v847_v32 = vpack.c.bf16 %v846_v31, %v846_v31  ;;  %v953_v63 = vrot.slane %v846_v31, 4 }
0x1371   :  { %v849_v33 = vrot.slane %v847_v32, 2 }
0x1373   :  { %850 = vrot.lane.b32.xlu1 %v849_v33, %s1603_s26 }
0x13e5   :  { %v851_v34 = vpop.permute.xlu1 %850 }
0x13e6   :  { %1431 = vmatmul.mubr.msk.bf16.vlgmr.msra.gmra.mrb[8].mxu0 %vm305_vm5, %v851_v34  ;;  %v1530_v34 = vld [vmem:[%s1937_s2 + $0x150] ss:$8 sps:$4 sm:$0xff]  }
0x13e7   :  { %1456 = vmatprep.mubr.msk.bf16.mxu0 %vm1600_vm0, %v1599_v2 }
0x14b9   :  { %v889_v35 = vpop.f32.mrb[8].mxu0 }
0x14ba   :  { %v896_v36 = vrot.slane %v889_v35, 2  ;;  %v1432_v37 = vpop.f32.mrb[9].mxu0  ;;  %v1531_v35 = vld [vmem:[%s1937_s2 + $0x160] ss:$0 sps:$4 sm:$0xff]  }
0x14bb   :  { %v892_v39 = vpop.f32.mrb[10].mxu0 }
0x14bc   :  { %v898_v40 = vadd.f32 %v896_v36, %v1667_v18  ;;  %v1433_v42 = vpop.f32.mrb[11].mxu0  ;;  %v1521_v18 = vld [vmem:[%s1937_s2 + $0xc0] ss:$8 sps:$4 sm:$0xff]   ;;  %v1165_v36 = vsel %vm1163_vm2, %v1531_v35, 0 }
0x14bd   :  { %1451 = vmatpush3.bf16.msra.mxu0 %v1521_v18 }
0x14be   :  { %1590 = vtanh.f32 %v898_v40  ;;  %v1324_v45 = vmul.f32 -1.442695, %v898_v40  ;;  %1452 = vmatprep.subr.bf16.mxu0 %v1599_v2 }
0x14c0   :  { %1592 = vpow2.f32 %v1324_v45  ;;  %v1336_v45 = vld [vmem:[%s1938_s3 + $0x2] ss:$0 sm:$0xff] }
0x14c1   :  { %1453 = vmatpush3.bf16.msra.mxu0 %v1522_v52  ;;  %v1532_v52 = vld [vmem:[%s1937_s2 + $0x170] ss:$8 sps:$4 sm:$0xff]  }
0x14c2   :  { %1454 = vmatprep.subr.bf16.mxu0 %v1599_v2 }
0x14c8   :  { %v1591_v43 = vpop.eup %1590 }
0x14c9   :  { %911 = vrot.lane.b32.xlu0 %v1591_v43, %s1601_s24 }
0x14ca   :  { %v1593_v47 = vpop.eup %1592 }
0x14cb   :  { %v902_v48 = vadd.f32 1.0, %v1593_v47 }
0x14cd   :  { %202 = vrot.lane.b32.xlu0 %v1815_v44, %s1601_s24  ;;  %1594 = vrcp.f32 %v902_v48 }
0x14d7   :  { %v1844_v49 = vpop.eup %1594 }
0x153b   :  { %v912_v50 = vpop.permute.xlu0 %911 }
0x153c   :  { %v914_v51 = vmul.f32 %v1844_v49, %v912_v50 }
0x153e   :  { %916 = vrot.lane.b32.xlu1 %v914_v51, %s1602_s25 }
0x153f   :  { %v203_v56 = vpop.permute.xlu0 %202 }
0x1540   :  { %v205_v5 = vmax.f32 %v1815_v44, %v203_v56 }
0x1542   :  { %207 = vrot.lane.b32.xlu1 %v1817_v20, %s1601_s24  ;;  %v1523_v20 = vld [vmem:[%s1937_s2 + $0xe0] ss:$0 sps:$4 sm:$0x33]  }
0x1543   :  { %v1093_v13 = vsel %vm151_vm8, %v1523_v20, 0  ;;  %v1533_v20 = vld [vmem:[%s1937_s2 + $0x180] ss:$8 sps:$4 sm:$0x7f]  }
0x1544   :  { %1455 = vmatpush3.bf16.msra.mxu0 %v1093_v13  ;;  %v1337_v13 = vld [vmem:[%s1938_s3 + $0x3] ss:$0 sm:$0xff] }
0x1545   :  { %1460 = vmatprep.subr.bf16.mxu0 %v1599_v2 }
0x1546   :  { %927 = vrot.lane.b32.xlu1 %v1675_v38, %s1603_s26  ;;  %v909_v38 = vmul.f32 %v1844_v49, %v907_v53  ;;  %s1605_s26 = smov 56  }
0x15b0   :  { %v917_v54 = vpop.permute.xlu1 %916 }
0x15b1   :  { %v919_v55 = vadd.f32 %v917_v54, %v909_v38  ;;  %v1235_v38 = vsel %vm1233_vm3, %v1533_v20, 0 }
0x15b3   :  { %1596 = vtanh.f32 %v919_v55 }
0x15b4   :  { %v208_v57 = vpop.permute.xlu1 %207 }
0x15b5   :  { %v210_v58 = vsel %vm209_vm9, %v203_v56, %v208_v57 }
0x15b6   :  { %v212_v59 = vmax.f32 %v1815_v44, %v210_v58 }
0x15b8   :  { %214 = vrot.lane.b32.xlu1 %v212_v59, %s1605_s26  ;;  %v928_v7 = vpop.permute.xlu1 %927 }
0x15bc   :  { %944 = vrot.lane.b32.xlu1 %v1805_v41, %s1606_s0  ;;  %v1526_v41 = vld [vmem:[%s1937_s2 + $0x110] ss:$8 sps:$4 sm:$0xff]  }
0x15bd   :  { %v1597_v61 = vpop.eup %1596  ;;  %1439 = vmatpush3.bf16.msra.mxu1 %v1526_v41 }
0x15be   :  { %922 = vrot.lane.b32.xlu0 %v1597_v61, %s1602_s25  ;;  %1440 = vmatprep.subr.bf16.mxu1 %v1599_v2 }
0x15c0   :  { %954 = vrot.lane.b32.xlu1 %v953_v63, %s1607_s27 }
0x15c1   :  { %1441 = vmatpush3.bf16.msra.mxu1 %v1527_v60 }
0x15c2   :  { %932 = vrot.lane.b32.xlu0 %v931_v1, %s1608_s28  ;;  %1442 = vmatprep.subr.bf16.mxu1 %v1599_v2 }
0x15c5   :  { %1443 = vmatpush3.bf16.msra.mxu1 %v1528_v46 }
0x15c6   :  { %940 = vrot.lane.b32.xlu0 %v939_v4, %s1602_s25  ;;  %1444 = vmatprep.subr.bf16.mxu1 %v1599_v2 }
0x15c9   :  { %1445 = vmatpush3.bf16.msra.mxu1 %v1529_v8 }
0x15ca   :  { %949 = vrot.lane.b32.xlu0 %v948_v6, %s1609_s7 }
0x162a   :  { %v215_v9 = vpop.permute.xlu1 %214 }
0x162b   :  { %v217_v10 = vmax.f32 %v205_v5, %v215_v9 }
0x162d   :  { %v223_v11 = vadd.f32 %v1305_v3, %v217_v10 }
0x162e   :  { %v945_v26 = vpop.permute.xlu1 %944 }
0x162f   :  { %v224_v12 = vmax.f32 %v223_v11, 0.0 }
0x1630   :  { %v923_v14 = vpop.permute.xlu0 %922 }
0x1631   :  { %v976_v15 = vpack.c.bf16 %v224_v12, %v224_v12  ;;  %v925_v16 = vmul.f32 %v1844_v49, %v923_v14 }
0x1632   :  { %v955_v23 = vpop.permute.xlu1 %954 }
0x1633   :  { %v958_v17 = vrot.slane %v925_v16, 6  ;;  %1457 = vmatmul.mubr.msk.bf16.vlgmr.msra.gmra.mrb[12].mxu0 %vm965_vm10, %v976_v15 }
0x1634   :  { %v933_v21 = vpop.permute.xlu0 %932  ;;  %1464 = vmatprep.mubr.msk.bf16.mxu0 %vm1600_vm0, %v1599_v2  ;;  %1461 = vmatpush3.bf16.msra.mxu0 %v1530_v34 }
0x1635   :  { %v962_v44 = vsel %vm305_vm5, %v928_v7, %v933_v21  ;;  %959 = vrot.lane.b32.xlu0 %v958_v17, %s1610_s13  ;;  %1462 = vmatprep.subr.bf16.mxu0 %v1599_v2 }
0x1636   :  { %v964_v22 = vsel %vm963_vm11, %v962_v44, %v936_v19 }
0x1638   :  { %v941_v24 = vpop.permute.xlu0 %940  ;;  %1463 = vmatpush3.bf16.msra.mxu0 %v1165_v36 }
0x1639   :  { %v966_v25 = vsel %vm965_vm10, %v964_v22, %v941_v24  ;;  %1468 = vmatprep.subr.bf16.mxu0 %v1599_v2 }
0x163a   :  { %v968_v28 = vsel %vm967_vm12, %v966_v25, %v945_v26 }
0x163c   :  { %v950_v27 = vpop.permute.xlu0 %949 }
0x163d   :  { %v970_v29 = vsel %vm969_vm13, %v968_v28, %v950_v27 }
0x163e   :  { %v972_v30 = vsel %vm971_vm14, %v970_v29, %v955_v23 }
0x16a7   :  { %v960_v31 = vpop.permute.xlu0 %959 }
0x16a8   :  { %v974_v32 = vsel %vm973_vm15, %v972_v30, %v960_v31 }
0x16a9   :  { %v975_v33 = vpack.c.bf16 %v974_v32, %v974_v32 }
0x16ab   :  { %1447 = vmatmul.mubr.msk.bf16.vlgmr.msra.gmra.mrb[28].mxu1 %vm1030_vm1, %v975_v33 }
0x1706   :  { %v1129_v37 = vpop.f32.mrb[12].mxu0 }
0x1707   :  { %v1458_v39 = vpop.f32.mrb[13].mxu0 }
0x1708   :  { %v1132_v40 = vpop.f32.mrb[14].mxu0 }
0x1709   :  { %v1459_v42 = vpop.f32.mrb[15].mxu0 }
0x177e   :  { %v1068_v43 = vpop.f32.mrb[28].mxu1 }
0x177f   :  { %v1130_v47 = vadd.f32 %v1129_v37, %v1068_v43  ;;  %v1448_v48 = vpop.f32.mrb[29].mxu1 }
0x1780   :  { %v1071_v49 = vpop.f32.mrb[30].mxu1 }
0x1781   :  { %v1140_v50 = vadd.f32 %v1336_v45, %v1130_v47  ;;  %v1449_v51 = vpop.f32.mrb[31].mxu1 }
0x1783   :  { %v1141_v18 = vmax.f32 %v1140_v50, 0.0 }
0x1785   :  { %v1142_v53 = vpack.c.bf16 %v1141_v18, %v1141_v18 }
0x1787   :  { %1465 = vmatmul.mubr.msk.bf16.vlgmr.msra.gmra.mrb[16].mxu0 %vm963_vm11, %v1142_v53 }
0x1788   :  { %1469 = vmatpush3.bf16.msra.mxu0 %v1532_v52  ;;  %1472 = vmatprep.mubr.msk.bf16.mxu0 %vm1600_vm0, %v1599_v2  ;;  %vm1229_vm0 = vcmask 244736  }
0x1789   :  { %1470 = vmatprep.subr.bf16.mxu0 %v1599_v2  ;;  %v1341_v2 = vld [vmem:[%s1938_s3 + $0x4] ss:$0 sm:$0xff] }
0x178c   :  { %1471 = vmatpush3.bf16.msra.mxu0 %v1235_v38 }
0x185a   :  { %v1201_v54 = vpop.f32.mrb[16].mxu0 }
0x185b   :  { %v1202_v55 = vadd.f32 %v1337_v13, %v1201_v54  ;;  %v1466_v56 = vpop.f32.mrb[17].mxu0 }
0x185c   :  { %v1204_v57 = vpop.f32.mrb[18].mxu0 }
0x185d   :  { %v1207_v58 = vmax.f32 %v1202_v55, 0.0  ;;  %v1467_v59 = vpop.f32.mrb[19].mxu0 }
0x185f   :  { %v1208_v61 = vpack.c.bf16 %v1207_v58, %v1207_v58 }
0x1861   :  { %1473 = vmatmul.mubr.msk.bf16.vlgmr.msra.gmra.mrb[20].mxu0 %vm1229_vm0, %v1208_v61 }
0x1934   :  { %v1271_v62 = vpop.f32.mrb[20].mxu0 }
0x1935   :  { %v1272_v63 = vadd.f32 %v1341_v2, %v1271_v62  ;;  %v1474_v0 = vpop.f32.mrb[21].mxu0 }
0x1936   :  { %v1274_v1 = vpop.f32.mrb[22].mxu0 }
0x1937   :  { %1278 = vst.msk [vmem:[%s1940_s4] sm:$0x3] %vm1277_vm4, %v1272_v63  ;;  %v1475_v41 = vpop.f32.mrb[23].mxu0 }

</bundles_post_ra>
